<compile_context>
chip_gen: v7x
topology: tpu7x:2x2x1
jax: 0.10.0
libtpu: 0.0.40
codegen_flags: <defaults>
</compile_context>

<pallas_src>
import functools

import numpy as np
import jax
import jax.numpy as jnp
from jax.experimental import pallas as pl
from jax.experimental.pallas import tpu as pltpu


def _round_up(v: int, m: int) -> int:
    return ((v + m - 1) // m) * m


def _gfp_kernel(x_ref, w_ref, p_ref, o_ref, *, use_log: bool):
    # x_ref: (tb, 1)  noise levels (column -> sublanes)
    # w_ref: (1, E)   2*pi * weight (lanes), VMEM-resident across the grid
    # p_ref: (1, E)   2*pi * phase  (lanes), VMEM-resident across the grid
    # o_ref: (tb, E)  cos projection tile
    x = x_ref[...]
    # Per-row log: tb EUP ops (not tb*E); the broadcast happens in the mul.
    lx = jnp.log(x) if use_log else x
    # NOTE: in the trailing partial B-block the rows beyond B hold garbage
    # (the input DMA only fills valid rows) and may become NaN here; that is
    # safe because the output writeback masks those rows. Do NOT add any
    # reduction over the sublane axis without re-introducing row padding.
    o_ref[...] = jnp.cos(lx * w_ref[...] + p_ref[...]).astype(o_ref.dtype)


def gaussian_fourier_projection(x, weight, phase, *, log=True, block_b=4096,
                                out_dtype=jnp.float32):
    """Pallas TPU GaussianFourierProjection forward.

    Args:
      x:         (B,) float32 noise levels (must be > 0 if log=True, matching
                 the PyTorch module: log of non-positive x gives NaN parity).
      weight:    (E,) float32 fixed Gaussian weights.
      phase:     (E,) float32 fixed phases.
      log:       apply log(x) first (module's `self.log`).
      block_b:   max tile size along B (rounded up to the sublane granule).
      out_dtype: output dtype; jnp.bfloat16 halves the HBM writeback (the
                 kernel's dominant cost) with negligible accuracy loss since
                 cos output lies in [-1, 1].
    Returns:
      (B, E) array of cos projections in `out_dtype`.
    """
    B = int(x.shape[0])
    E = int(weight.shape[0])
    two_pi = np.float32(2.0 * np.pi)

    # Fold 2*pi into the (E,) constants once in the wrapper. (Rounding differs
    # from the reference "(lx*w + p)*2*pi" by a few ULP — same class of f32
    # range-reduction limitation as the PyTorch f32 baseline.)
    w2 = (weight.astype(jnp.float32) * two_pi).reshape(1, E)
    p2 = (phase.astype(jnp.float32) * two_pi).reshape(1, E)
    x2 = x.astype(jnp.float32).reshape(B, 1)

    # Sublane granule for the output dtype (8 rows for 4-byte, 16 for 2-byte).
    sub = 8 if jnp.dtype(out_dtype).itemsize >= 4 else 16
    block_b = max(sub, _round_up(int(block_b), sub))

    if B <= sub:
        tb = B  # single full-extent block (legal: equals the array dim)
    else:
        # Aim for >= 2 tiles so the "parallel" axis can shard across the two
        # TensorCores on v7x; cap at block_b to bound VMEM.
        tb = min(block_b, _round_up(pl.cdiv(B, 2), sub))
    n_tiles = pl.cdiv(B, tb)

    itemsize = jnp.dtype(out_dtype).itemsize
    cost = pl.CostEstimate(
        flops=3 * B * E,                                  # mul + add + cast
        transcendentals=B * E + (B if log else 0),        # cos (+ log)
        bytes_accessed=itemsize * B * E + 4 * (B + 2 * E),
    )

    out = pl.pallas_call(
        functools.partial(_gfp_kernel, use_log=log),
        out_shape=jax.ShapeDtypeStruct((B, E), out_dtype),
        grid=(n_tiles,),
        in_specs=[
            pl.BlockSpec((tb, 1), lambda i: (i, 0)),   # x tile follows grid
            pl.BlockSpec((1, E), lambda i: (0, 0)),    # weight: VMEM-resident
            pl.BlockSpec((1, E), lambda i: (0, 0)),    # phase:  VMEM-resident
        ],
        out_specs=pl.BlockSpec((tb, E), lambda i: (i, 0)),
        compiler_params=pltpu.CompilerParams(
            dimension_semantics=("parallel",),  # independent B tiles
        ),
        cost_estimate=cost,
    )(x2, w2, p2)
    return out


if __name__ == "__main__":
    key = jax.random.PRNGKey(0)
    k_x, k_w, k_p = jax.random.split(key, 3)

    B = 8            # small batch of noise levels
    E = 256          # embedding_size (module default)
    scale = 1.0

    # Parameter init mimicking the module's __init__:
    #   weight = randn(E) * scale ; phase = rand(E)
    weight = jax.random.normal(k_w, (E,), dtype=jnp.float32) * scale
    phase = jax.random.uniform(k_p, (E,), dtype=jnp.float32)

    # Positive noise levels (log is applied inside the kernel).
    x = jax.random.uniform(k_x, (B,), dtype=jnp.float32, minval=0.1, maxval=10.0)

    out = gaussian_fourier_projection(x, weight, phase, log=True)
    out = jax.block_until_ready(out)

    # Reference (same math as the PyTorch module, plain JAX).
    ref = jnp.cos((jnp.log(x)[:, None] * weight[None, :] + phase[None, :]) * 2.0 * np.pi)
    assert out.shape == (B, E) and out.dtype == jnp.float32
    np.testing.assert_allclose(np.asarray(out), np.asarray(ref), rtol=1e-5, atol=3e-5)

    # Multi-tile grid with a masked trailing partial block (B=37, tb=16 -> 3
    # tiles, last block has 5 valid rows) and no pad/slice round trip.
    B2 = 37
    x2 = jax.random.uniform(jax.random.PRNGKey(1), (B2,), dtype=jnp.float32,
                            minval=0.1, maxval=10.0)
    out2 = jax.block_until_ready(
        gaussian_fourier_projection(x2, weight, phase, log=True, block_b=16))
    ref2 = jnp.cos((jnp.log(x2)[:, None] * weight[None, :] + phase[None, :]) * 2.0 * np.pi)
    assert out2.shape == (B2, E)
    np.testing.assert_allclose(np.asarray(out2), np.asarray(ref2), rtol=1e-5, atol=3e-5)

    # bf16 output path (halves the HBM writeback); sublane granule becomes 16.
    out3 = jax.block_until_ready(
        gaussian_fourier_projection(x2, weight, phase, log=True, block_b=16,
                                    out_dtype=jnp.bfloat16))
    assert out3.shape == (B2, E) and out3.dtype == jnp.bfloat16
    np.testing.assert_allclose(np.asarray(out3, dtype=np.float32),
                               np.asarray(ref2), rtol=0.0, atol=1e-2)

    print("KERNEL_OK")
</pallas_src>

<mosaic_0001>
module attributes {stable_mosaic.version = 11 : i64} {
  func.func @_gfp_kernel(%arg0: i32, %arg1: memref<8x1xf32, #tpu.memory_space<vmem>>, %arg2: memref<1x256xf32, #tpu.memory_space<vmem>>, %arg3: memref<1x256xf32, #tpu.memory_space<vmem>>, %arg4: memref<8x256xf32, #tpu.memory_space<vmem>>) attributes {dimension_semantics = [#tpu.dimension_semantics<parallel>], iteration_bounds = array<i64: 1>, scalar_prefetch = 0 : i64, scratch_operands = 0 : i64, tpu.core_type = #tpu.core_type<tc>, window_params = [{transform_indices = @transform_0, window_bounds = array<i64: 8, 1>}, {pipeline_mode = #tpu.pipeline_mode<synchronous>, transform_indices = @transform_1, window_bounds = array<i64: 1, 256>}, {pipeline_mode = #tpu.pipeline_mode<synchronous>, transform_indices = @transform_2, window_bounds = array<i64: 1, 256>}, {transform_indices = @transform_3, window_bounds = array<i64: 8, 256>}]} {
    %c0 = arith.constant 0 : index
    %c0_0 = arith.constant 0 : index
    %0 = vector.load %arg1[%c0, %c0_0] : memref<8x1xf32, #tpu.memory_space<vmem>>, vector<8x1xf32>
    %1 = math.log %0 : vector<8x1xf32>
    %c0_1 = arith.constant 0 : index
    %c0_2 = arith.constant 0 : index
    %2 = vector.load %arg2[%c0_1, %c0_2] : memref<1x256xf32, #tpu.memory_space<vmem>>, vector<1x256xf32>
    %3 = vector.broadcast %1 : vector<8x1xf32> to vector<8x256xf32>
    %4 = vector.broadcast %2 : vector<1x256xf32> to vector<8x256xf32>
    %5 = arith.mulf %3, %4 : vector<8x256xf32>
    %c0_3 = arith.constant 0 : index
    %c0_4 = arith.constant 0 : index
    %6 = vector.load %arg3[%c0_3, %c0_4] : memref<1x256xf32, #tpu.memory_space<vmem>>, vector<1x256xf32>
    %7 = vector.broadcast %6 : vector<1x256xf32> to vector<8x256xf32>
    %8 = arith.addf %5, %7 : vector<8x256xf32>
    %9 = math.cos %8 : vector<8x256xf32>
    %c0_5 = arith.constant 0 : index
    %c0_6 = arith.constant 0 : index
    %10 = vector.load %arg4[%c0_5, %c0_6] : memref<8x256xf32, #tpu.memory_space<vmem>>, vector<8x256xf32>
    tpu.vector_store %arg4[%c0_5, %c0_6], %9 {strides = array<i32>} : memref<8x256xf32, #tpu.memory_space<vmem>>, vector<8x256xf32>,
    return
  }
  func.func @transform_0(%arg0: i32) -> (i32, i32) {
    %c0_i32 = arith.constant 0 : i32
    %c0_i32_0 = arith.constant 0 : i32
    return %arg0, %c0_i32 : i32, i32
  }
  func.func @transform_1(%arg0: i32) -> (i32, i32) {
    %c0_i32 = arith.constant 0 : i32
    %c0_i32_0 = arith.constant 0 : i32
    %c0_i32_1 = arith.constant 0 : i32
    return %c0_i32, %c0_i32_0 : i32, i32
  }
  func.func @transform_2(%arg0: i32) -> (i32, i32) {
    %c0_i32 = arith.constant 0 : i32
    %c0_i32_0 = arith.constant 0 : i32
    %c0_i32_1 = arith.constant 0 : i32
    return %c0_i32, %c0_i32_0 : i32, i32
  }
  func.func @transform_3(%arg0: i32) -> (i32, i32) {
    %c0_i32 = arith.constant 0 : i32
    %c0_i32_0 = arith.constant 0 : i32
    return %arg0, %c0_i32 : i32, i32
  }
}

</mosaic_0001>

<bundles_post_ra>
// kernel: tpu_custom_call.1
= control target key start
LH: loop header
LB: loop body
LE: loop exit
PB: predicated region body
PF: predicated region fallthrough
CT: control target
= control target key end

     0   :  { %v332_v1 = vmov 0   ;;  %s468_s0 = inlined_call_operand.vmem [shape: f32[8,1], index: 0, kind: input, shape index: {}]   ;;  %s469_s1 = inlined_call_operand.vmem [shape: f32[1,256], index: 1, kind: input, shape index: {}]   ;;  %s470_s2 = inlined_call_operand.vmem [shape: f32[1,256], index: 2, kind: input, shape index: {}]   ;;  %s471_s3 = inlined_call_operand.hbm [shape: f32[8,256], index: 3, kind: output, shape index: {}]  }
   0x1   :  { %v15_v0 = vld [vmem:[%s468_s0] sm:$0xff]  ;;  %297 = vset.pattern.permute.xlu0 %v332_v1 }
   0x2   :  { %298 = vlog2.f32 %v15_v0 }
   0x3   :  { %8 = vsyncpa [#allocation3], 0  ;;  %v25_v4 = vlaneseq  ;;  %v18_v8 = vld [vmem:[%s469_s1] sm:$0x3]  ;;  %v333_v41 = vmov 2102212464  }
   0x4   :  { %v37_v9 = vld [vmem:[%s470_s2] sm:$0x3]  ;;  %v334_v43 = vmov 920167782   ;;  %v335_v47 = vmov 1326507024  }
   0x5   :  { %v26_v5 = vshrl.u32 %v25_v4, 7  ;;  %v336_v53 = vmov 683565275   ;;  %v337_v55 = vmov 2475754826   ;;  %s339_s0 = smov [#allocation2]  }
   0x6   :  { %v338_v60 = vmov 2131351028   ;;  %s265_s1 = sshll.u32 %s339_s0, 4  ;;  %s266_s1 = int_to_ptr.vmem [resolvable:$true] %s265_s1 }
   0x7   :  { %v27_v6 = vsub.s32 0, %v26_v5  ;;  %v31_v7 = vsub.s32 1, %v26_v5  ;;  %s308_s2 = scalar_lea.vmem %s266_s1, 256  ;;  %p313_p1 = scmp.lt.s32.totalorder %s266_s1, %s266_s1 }
   0x8   :  { %p309_p0 = scmp.ne.s32.totalorder %s266_s1, %s308_s2  ;;  %p314_p2 = scmp.lt.s32.totalorder %s308_s2, %s308_s2 }
   0x9   :  { %v28_v10 = vrot.slane %v18_v8, %v27_v6  ;;  %v32_v11 = vrot.slane %v18_v8, %v31_v7  ;;  %v42_v12 = vrot.slane %v37_v9, %v27_v6  ;;  %v46_v13 = vrot.slane %v37_v9, %v31_v7 }
   0xa   :  { %p315_p3 = por %p314_p2, %p313_p1 }
   0xc   :  { %v299_v2 = vpop.eup %298  ;;  %p316_p4 = pnand %p315_p3, %p309_p0 }
   0xd   :  { %v17_v3 = vmul.f32 0.6931472, %v299_v2 }
   0xf   :  { %21 = vperm.xlu0 %297, %v17_v3  }
  0x8e   :  { %v22_v14 = vpop.permute.xlu0 %21 }
  0x8f   :  { %v35_v15 = vmul.f32 %v28_v10, %v22_v14  ;;  %v36_v16 = vmul.f32 %v32_v11, %v22_v14 }
  0x91   :  { %v369_v17 = vadd.f32 %v42_v12, %v35_v15  ;;  %v371_v18 = vadd.f32 %v46_v13, %v36_v16 }
  0x93   :  { %v54_v19 = vand.u32 2139095040, %v369_v17  ;;  %v157_v20 = vand.u32 2139095040, %v371_v18  ;;  %v51_v21 = vand.u32 2147483647, %v369_v17  ;;  %v154_v27 = vand.u32 2147483647, %v371_v18 }
  0x94   :  { %vm53_vm14 = vcmp.lt.s32.totalorder %v369_v17, 0 }
  0x95   :  { %v55_v22 = vshrl.u32 %v54_v19, 23  ;;  %v158_v23 = vshrl.u32 %v157_v20, 23  ;;  %v58_v26 = vand.u32 8388607, %v51_v21  ;;  %v381_v31 = vand.u32 8388607, %v154_v27 }
  0x96   :  { %vm433_vm15 = vcmp.le.f32.partialorder %v51_v21, 0.7853982 }
  0x97   :  { %v273_v24 = vadd.s32 4294967169, %v55_v22  ;;  %v277_v25 = vadd.s32 4294967169, %v158_v23  ;;  %v59_v30 = vor.u32 8388608, %v58_v26  ;;  %v162_v40 = vor.u32 8388608, %v381_v31 }
  0x99   :  { %v61_v28 = vadd.s32 1, %v273_v24  ;;  %v164_v29 = vadd.s32 1, %v277_v25  ;;  %v385_v39 = vshll.u32 %v59_v30, 8 }
  0x9b   :  { %vm62_vm0 = vcmp.gt.s32.totalorder %v61_v28, 0  ;;  %vm165_vm1 = vcmp.gt.s32.totalorder %v164_v29, 0 }
  0x9c   :  { %v63_v32 = vsel %vm62_vm0, %v61_v28, 0  ;;  %v166_v33 = vsel %vm165_vm1, %v164_v29, 0  ;;  %vm156_vm0 = vcmp.lt.s32.totalorder %v371_v18, 0  ;;  %vm445_vm1 = vcmp.le.f32.partialorder %v154_v27, 0.7853982 }
  0x9d   :  { %v64_v34 = vshrl.u32 %v63_v32, 5  ;;  %v65_v35 = vand.u32 31, %v63_v32  ;;  %v168_v36 = vand.u32 31, %v166_v33  ;;  %v383_v38 = vshrl.u32 %v166_v33, 5 }
  0x9f   :  { %v66_v37 = vsub.s32 32, %v65_v35  ;;  %v77_v42 = vshll.u32 %v333_v41, %v65_v35  ;;  %v80_v44 = vshll.u32 %v334_v43, %v65_v35  ;;  %vm86_vm2 = vcmp.lt.s32.totalorder %v64_v34, 4 }
  0xa0   :  { %v169_v45 = vsub.s32 32, %v168_v36  ;;  %v180_v49 = vshll.u32 %v333_v41, %v168_v36  ;;  %v183_v50 = vshll.u32 %v334_v43, %v168_v36  ;;  %v68_v54 = vshll.u32 %v336_v53, %v65_v35 }
  0xa1   :  { %v78_v46 = vshrl.u32 %v334_v43, %v66_v37  ;;  %v81_v48 = vshrl.u32 %v335_v47, %v66_v37  ;;  %v69_v56 = vshrl.u32 %v337_v55, %v66_v37  ;;  %v71_v59 = vshll.u32 %v337_v55, %v65_v35 }
  0xa2   :  { %v181_v51 = vshrl.u32 %v334_v43, %v169_v45  ;;  %v184_v52 = vshrl.u32 %v335_v47, %v169_v45  ;;  %v72_v61 = vshrl.u32 %v338_v60, %v66_v37  ;;  %vm189_vm3 = vcmp.lt.s32.totalorder %v383_v38, 4 }
  0xa3   :  { %v79_v57 = vor.u32 %v78_v46, %v77_v42  ;;  %v82_v58 = vor.u32 %v81_v48, %v80_v44  ;;  %v70_v62 = vor.u32 %v69_v56, %v68_v54  ;;  %v74_v63 = vshll.u32 %v338_v60, %v65_v35 }
  0xa4   :  { %v75_v0 = vshrl.u32 %v333_v41, %v66_v37  ;;  %v67_v3 = vshrl.u32 %v336_v53, %v66_v37  ;;  %v73_v4 = vor.u32 %v72_v61, %v71_v59  ;;  %v182_v5 = vor.u32 %v181_v51, %v180_v49 }
  0xa5   :  { %v92_v1 = vsel %vm86_vm2, %v79_v57, 920167782  ;;  %v96_v2 = vsel %vm86_vm2, %v82_v58, 1326507024  ;;  %v185_v6 = vor.u32 %v184_v52, %v183_v50  ;;  %vm83_vm4 = vcmp.lt.s32.totalorder %v64_v34, 1 }
  0xa6   :  { %v76_v7 = vor.u32 %v75_v0, %v74_v63  ;;  %vm84_vm5 = vcmp.lt.s32.totalorder %v64_v34, 2  ;;  %vm85_vm6 = vcmp.lt.s32.totalorder %v64_v34, 3  ;;  %v87_v8 = vsel %vm83_vm4, %v67_v3, %v70_v62 }
  0xa7   :  { %v91_v9 = vsel %vm83_vm4, %v70_v62, %v73_v4  ;;  %v97_v13 = vsel %vm85_vm6, %v79_v57, %v96_v2  ;;  %v171_v19 = vshll.u32 %v336_v53, %v168_v36  ;;  %v172_v24 = vshrl.u32 %v337_v55, %v169_v45 }
  0xa8   :  { %v88_v10 = vsel %vm86_vm2, %v76_v7, 2102212464  ;;  %v93_v11 = vsel %vm85_vm6, %v76_v7, %v92_v1  ;;  %v95_v12 = vsel %vm83_vm4, %v73_v4, %v76_v7  ;;  %v199_v25 = vsel %vm189_vm3, %v185_v6, 1326507024 }
  0xa9   :  { %v89_v14 = vsel %vm85_vm6, %v73_v4, %v88_v10  ;;  %v94_v15 = vsel %vm84_vm5, %v91_v9, %v93_v11  ;;  %v98_v16 = vsel %vm84_vm5, %v95_v12, %v97_v13  ;;  %v174_v29 = vshll.u32 %v337_v55, %v168_v36 }
  0xaa   :  { %v90_v20 = vsel %vm84_vm5, %v87_v8, %v89_v14  ;;  %v393_v22 = vmul.u32.u64.low %v385_v39, %v98_v16  ;;  %v394_v23 = vmul.u32.u64.high %v385_v39, %v98_v16, %v393_v22  ;;  %v173_v30 = vor.u32 %v172_v24, %v171_v19 }
  0xab   :  { %v399_v26 = vmul.u32.u64.low %v385_v39, %v94_v15  ;;  %v400_v28 = vmul.u32.u64.high %v385_v39, %v94_v15, %v399_v26  ;;  %v175_v31 = vshrl.u32 %v338_v60, %v169_v45  ;;  %v177_v32 = vshll.u32 %v338_v60, %v168_v36 }
  0xac   :  { %v178_v33 = vshrl.u32 %v333_v41, %v169_v45  ;;  %v195_v34 = vsel %vm189_vm3, %v182_v5, 920167782  ;;  %v106_v35 = vmul.u32 %v385_v39, %v90_v20  ;;  %v170_v37 = vshrl.u32 %v336_v53, %v169_v45 }
  0xad   :  { %v202_v42 = vshll.u32 %v162_v40, 8  ;;  %vm108_vm7 = vc.u32 %v394_v23, %v399_v26  ;;  %v176_v43 = vor.u32 %v175_v31, %v174_v29  ;;  %vm188_vm8 = vcmp.lt.s32.totalorder %v383_v38, 3 }
  0xae   :  { %v179_v44 = vor.u32 %v178_v33, %v177_v32  ;;  %v109_v46 = vadd.s32 1, %v400_v28  ;;  %vm186_vm9 = vcmp.lt.s32.totalorder %v383_v38, 1  ;;  %vm187_vm10 = vcmp.lt.s32.totalorder %v383_v38, 2 }
  0xaf   :  { %v200_v36 = vsel %vm188_vm8, %v182_v5, %v199_v25  ;;  %v194_v47 = vsel %vm186_vm9, %v173_v30, %v176_v43  ;;  %v190_v48 = vsel %vm186_vm9, %v170_v37, %v173_v30  ;;  %v107_v11 = vadd.s32 %v399_v26, %v394_v23 }
  0xb0   :  { %v191_v41 = vsel %vm189_vm3, %v179_v44, 2102212464  ;;  %v196_v39 = vsel %vm188_vm8, %v179_v44, %v195_v34  ;;  %v198_v45 = vsel %vm186_vm9, %v176_v43, %v179_v44  ;;  %v110_v40 = vsel %vm108_vm7, %v109_v46, %v400_v28 }
  0xb1   :  { %v197_v49 = vsel %vm187_vm10, %v194_v47, %v196_v39  ;;  %v201_v50 = vsel %vm187_vm10, %v198_v45, %v200_v36  ;;  %v111_v51 = vadd.s32 %v110_v40, %v106_v35  ;;  %v192_v52 = vsel %vm188_vm8, %v176_v43, %v191_v41 }
  0xb2   :  { %v417_v53 = vmul.u32.u64.low %v202_v42, %v201_v50  ;;  %v418_v54 = vmul.u32.u64.high %v202_v42, %v201_v50, %v417_v53  ;;  %v420_v55 = vmul.u32.u64.low %v202_v42, %v197_v49  ;;  %v421_v56 = vmul.u32.u64.high %v202_v42, %v197_v49, %v420_v55 }
  0xb3   :  { %v112_v57 = vadd.s32 536870912, %v111_v51  ;;  %v193_v58 = vsel %vm187_vm10, %v190_v48, %v192_v52  ;;  %vm143_vm5 = vweird.f32 %v369_v17  ;;  %vm246_vm9 = vweird.f32 %v371_v18 }
  0xb4   :  { %vm211_vm11 = vc.u32 %v418_v54, %v420_v55  ;;  %v212_v60 = vadd.s32 1, %v421_v56  ;;  %v209_v62 = vmul.u32 %v202_v42, %v193_v58  ;;  %v210_v32 = vadd.s32 %v420_v55, %v418_v54 }
  0xb5   :  { %v113_v59 = vshrl.u32 %v112_v57, 30 }
  0xb6   :  { %v213_v63 = vsel %vm211_vm11, %v212_v60, %v421_v56 }
  0xb7   :  { %v114_v61 = vshll.u32 %v113_v59, 30  ;;  %v214_v1 = vadd.s32 %v213_v63, %v209_v62  ;;  %v137_v41 = vsub.s32 4, %v113_v59 }
  0xb9   :  { %v115_v0 = vsub.s32 %v111_v51, %v114_v61  ;;  %v215_v3 = vadd.s32 536870912, %v214_v1  ;;  %v138_v48 = vsel %vm53_vm14, %v137_v41, %v113_v59 }
  0xba   :  { %v140_v50 = vsel %vm433_vm15, 0, %v138_v48 }
  0xbb   :  { %v117_v2 = vsub.s32 0, %v115_v0  ;;  %v216_v5 = vshrl.u32 %v215_v3, 30  ;;  %v144_v54 = vand.u32 3, %v140_v50 }
  0xbd   :  { %v274_v4 = vmin.u32 %v117_v2, %v115_v0  ;;  %v217_v7 = vshll.u32 %v216_v5, 30  ;;  %v240_v53 = vsub.s32 4, %v216_v5  ;;  %vm149_vm2 = vcmp.eq.s32.totalorder %v144_v54, 2 }
  0xbe   :  { %vm146_vm3 = vcmp.eq.s32.totalorder %v144_v54, 0  ;;  %vm145_vm4 = vcmp.lt.s32.totalorder %v144_v54, 2 }
  0xbf   :  { %v119_v6 = vclz %v274_v4  ;;  %v218_v38 = vsub.s32 %v214_v1, %v217_v7  ;;  %v241_v59 = vsel %vm156_vm0, %v240_v53, %v216_v5 }
  0xc0   :  { %v243_v62 = vsel %vm445_vm1, 0, %v241_v59 }
  0xc1   :  { %v275_v8 = vadd.s32 4294967294, %v119_v6  ;;  %v220_v10 = vsub.s32 0, %v218_v38  ;;  %v247_v1 = vand.u32 3, %v243_v62 }
  0xc3   :  { %vm276_vm12 = vcmp.lt.s32.totalorder %v275_v8, 0  ;;  %v278_v14 = vmin.u32 %v220_v10, %v218_v38  ;;  %vm252_vm6 = vcmp.eq.s32.totalorder %v247_v1, 2  ;;  %vm249_vm7 = vcmp.eq.s32.totalorder %v247_v1, 0 }
  0xc4   :  { %v122_v9 = vsel %vm276_vm12, 0, %v275_v8  ;;  %vm248_vm8 = vcmp.lt.s32.totalorder %v247_v1, 2 }
  0xc5   :  { %v123_v12 = vsub.s32 32, %v122_v9  ;;  %v127_v13 = vsub.s32 4294967266, %v122_v9  ;;  %v124_v15 = vshll.u32 %v115_v0, %v122_v9  ;;  %v222_v20 = vclz %v278_v14 }
  0xc7   :  { %v125_v16 = vshrl.u32 %v107_v11, %v123_v12  ;;  %v128_v19 = vadd.s32 127, %v127_v13  ;;  %v279_v25 = vadd.s32 4294967294, %v222_v20 }
  0xc9   :  { %v126_v22 = vor.u32 %v125_v16, %v124_v15  ;;  %v129_v24 = vshll.u32 %v128_v19, 23  ;;  %vm280_vm13 = vcmp.lt.s32.totalorder %v279_v25, 0 }
  0xca   :  { %v225_v31 = vsel %vm280_vm13, 0, %v279_v25 }
  0xcb   :  { %v130_v28 = vor.u32 4788187, %v129_v24  ;;  %v133_v30 = vcvt.s32.f32 %v126_v22  ;;  %v226_v33 = vsub.s32 32, %v225_v31  ;;  %v230_v34 = vsub.s32 4294967266, %v225_v31 }
  0xcc   :  { %v227_v26 = vshll.u32 %v218_v38, %v225_v31 }
  0xcd   :  { %v131_v29 = vand.u32 2147483647, %v130_v28  ;;  %v228_v35 = vshrl.u32 %v210_v32, %v226_v33  ;;  %v231_v37 = vadd.s32 127, %v230_v34 }
  0xcf   :  { %v134_v23 = vmul.f32 %v133_v30, %v131_v29  ;;  %v229_v43 = vor.u32 %v228_v35, %v227_v26  ;;  %v232_v44 = vshll.u32 %v231_v37, 23 }
  0xd1   :  { %v135_v42 = vxor.u32 2147483648, %v134_v23  ;;  %v233_v39 = vor.u32 4788187, %v232_v44  ;;  %v236_v40 = vcvt.s32.f32 %v229_v43 }
  0xd3   :  { %v136_v36 = vsel %vm53_vm14, %v135_v42, %v134_v23  ;;  %v234_v45 = vand.u32 2147483647, %v233_v39 }
  0xd4   :  { %v139_v47 = vsel %vm433_vm15, %v369_v17, %v136_v36 }
  0xd5   :  { %300 = vcosq.f32 %v139_v47  ;;  %v237_v49 = vmul.f32 %v236_v40, %v234_v45 }
  0xd6   :  { %302 = vsinq.f32 %v139_v47 }
  0xd7   :  { %v238_v21 = vxor.u32 2147483648, %v237_v49 }
  0xd9   :  { %v239_v52 = vsel %vm156_vm0, %v238_v21, %v237_v49 }
  0xda   :  { %v242_v55 = vsel %vm445_vm1, %v371_v18, %v239_v52 }
  0xdb   :  { %304 = vcosq.f32 %v242_v55 }
  0xdc   :  { %306 = vsinq.f32 %v242_v55 }
  0xdf   :  { %v301_v56 = vpop.eup %300 }
  0xe0   :  { %v303_v57 = vpop.eup %302  ;;  %v150_v58 = vxor.u32 2147483648, %v301_v56 }
  0xe1   :  { %v147_v60 = vxor.u32 2147483648, %v303_v57 }
  0xe2   :  { %v151_v27 = vsel %vm149_vm2, %v150_v58, %v303_v57 }
  0xe3   :  { %v148_v61 = vsel %vm146_vm3, %v301_v56, %v147_v60 }
  0xe4   :  { %v152_v63 = vsel %vm145_vm4, %v148_v61, %v151_v27 }
  0xe5   :  { %v153_v0 = vsel %vm143_vm5, nan, %v152_v63  ;;  %v305_v2 = vpop.eup %304 }
  0xe6   :  { %257 = vst [vmem:[#allocation2] sm:$0xff] %v153_v0  ;;  %v307_v3 = vpop.eup %306  ;;  %v253_v4 = vxor.u32 2147483648, %v305_v2 }
  0xe7   :  { %v250_v6 = vxor.u32 2147483648, %v307_v3 }
  0xe8   :  { %v254_v5 = vsel %vm252_vm6, %v253_v4, %v307_v3 }
  0xe9   :  { %v251_v7 = vsel %vm249_vm7, %v305_v2, %v250_v6 }
  0xea   :  { %v255_v8 = vsel %vm248_vm8, %v251_v7, %v254_v5 }
  0xeb   :  { %v256_v17 = vsel %vm246_vm9, nan, %v255_v8 }
  0xec   :  { %258 = vst [vmem:[#allocation2 + $0x8] sm:$0xff] %v256_v17 }
  0xed   :  { %319 = shalt.err (!%p316_p4)
}
  0xee   :  { %s320_s20 = scalar_lea.hbm %s471_s3, 256 }
  0xef   :  { %p321_p5 = scmp.ne.s32.totalorder %s471_s3, %s320_s20  ;;  %p324_p6 = scmp.lt.u32.totalorder %s320_s20, %s471_s3 }
  0xf1   :  { %p326_p7 = pnand %p324_p6, %p321_p5 }
  0xf3   :  { %329 = shalt.err (!%p326_p7)
}
  0xf4   :  { %268 = dma.vmem_to_hbm [thread:$0]  %s266_s1, 256, %s471_s3, [#allocation3]  }
  0xf5   :  { %330 = dma.done.wait [#allocation3], 256  }
  0xf6   :  { %331 = vsyncadd [#allocation3], 4294967040 }
  0xf7   :  { %272 = vsyncpa [#allocation3], 1 }

</bundles_post_ra>
